<compile_context>
chip_gen: v6e
topology: v6e:2x2x1
jax: 0.10.0
libtpu: 0.0.40
codegen_flags: <defaults>
</compile_context>

<pallas_src>
import functools

import jax
import jax.numpy as jnp
from jax.experimental import pallas as pl
from jax.experimental.pallas import tpu as pltpu

_OUT_LANES = 128  # lane-dense padded output width (true out_dim = 20)


def _round_up(n, m):
    return ((n + m - 1) // m) * m


def _mlp_kernel(x_ref, w1_ref, b1_ref, w2_ref, b2_ref, w3_ref, b3_ref, o_ref):
    # Layer 1: h1 = relu(x @ W1 + b1); bf16 matmul, f32 accumulate, f32 VPU ops.
    h1 = jnp.dot(x_ref[...], w1_ref[...], preferred_element_type=jnp.float32)
    h1 = jnp.maximum(h1 + b1_ref[...], 0.0).astype(jnp.bfloat16)
    # Layer 2: h2 = relu(h1 @ W2 + b2)
    h2 = jnp.dot(h1, w2_ref[...], preferred_element_type=jnp.float32)
    h2 = jnp.maximum(h2 + b2_ref[...], 0.0).astype(jnp.bfloat16)
    # Layer 3: h3 = h2 @ W3 + b3  (no activation, matches PyTorch forward)
    h3 = jnp.dot(h2, w3_ref[...], preferred_element_type=jnp.float32)
    o_ref[...] = (h3 + b3_ref[...]).astype(o_ref.dtype)


@functools.partial(jax.jit, static_argnames=("block_b",))
def net_forward(x, params, *, block_b=256):
    """Forward pass of Net.

    x: [B, d] float32.  params: dict with W1[d,H], b1[H], W2[H,H], b2[H],
    W3[H,20], b3[20] (weights stored as [in, out]).
    Returns [B, 20] float32.
    """
    w1 = params["W1"].astype(jnp.bfloat16)
    w2 = params["W2"].astype(jnp.bfloat16)
    w3 = params["W3"].astype(jnp.bfloat16)
    b1r = params["b1"].reshape(1, -1).astype(jnp.float32)
    b2r = params["b2"].reshape(1, -1).astype(jnp.float32)

    B, d = x.shape
    H = w1.shape[1]
    out_dim = w3.shape[1]

    # Lane-pad the final layer to 128 output lanes (dense, unmasked stores).
    w3p = jnp.zeros((H, _OUT_LANES), jnp.bfloat16).at[:, :out_dim].set(w3)
    b3p = (jnp.zeros((1, _OUT_LANES), jnp.float32)
           .at[:, :out_dim].set(params["b3"].astype(jnp.float32)))

    # Batch tile: multiple of 8 sublanes; pad B up so the grid divides evenly.
    tb = min(block_b, _round_up(B, 8))
    b_pad = _round_up(B, tb)
    if b_pad != B:
        x = jnp.pad(x, ((0, b_pad - B), (0, 0)))
    x = x.astype(jnp.bfloat16)

    grid = (b_pad // tb,)

    out = pl.pallas_call(
        _mlp_kernel,
        out_shape=jax.ShapeDtypeStruct((b_pad, _OUT_LANES), jnp.float32),
        grid=grid,
        in_specs=[
            # x streams over the batch grid.
            pl.BlockSpec((tb, d), lambda i: (i, 0)),
            # Weights / biases: constant block index -> VMEM-resident, DMA'd once.
            pl.BlockSpec((d, H), lambda i: (0, 0)),
            pl.BlockSpec((1, H), lambda i: (0, 0)),
            pl.BlockSpec((H, H), lambda i: (0, 0)),
            pl.BlockSpec((1, H), lambda i: (0, 0)),
            pl.BlockSpec((H, _OUT_LANES), lambda i: (0, 0)),
            pl.BlockSpec((1, _OUT_LANES), lambda i: (0, 0)),
        ],
        out_specs=pl.BlockSpec((tb, _OUT_LANES), lambda i: (i, 0)),
        compiler_params=pltpu.CompilerParams(
            dimension_semantics=("parallel",),  # v7x: shard batch across 2 TCs
            vmem_limit_bytes=4 << 20,           # tiny kernel; don't hog VMEM
        ),
    )(x, w1, b1r, w2, b2r, w3p, b3p)

    return out[:B, :out_dim]


def init_params(key, d, H, out_dim=20):
    """Deterministic init mimicking nn.Linear's uniform(-1/sqrt(fan_in), ...)."""
    keys = jax.random.split(key, 6)

    def linear(kw, kb, fan_in, fan_out):
        bound = 1.0 / jnp.sqrt(jnp.float32(fan_in))
        W = jax.random.uniform(kw, (fan_in, fan_out), jnp.float32, -bound, bound)
        b = jax.random.uniform(kb, (fan_out,), jnp.float32, -bound, bound)
        return W, b

    W1, b1 = linear(keys[0], keys[1], d, H)
    W2, b2 = linear(keys[2], keys[3], H, H)
    W3, b3 = linear(keys[4], keys[5], H, out_dim)
    return {"W1": W1, "b1": b1, "W2": W2, "b2": b2, "W3": W3, "b3": b3}


def net_forward_ref_f32(x, params):
    """Pure-f32 JAX reference (matches PyTorch math exactly)."""
    h1 = jnp.maximum(x @ params["W1"] + params["b1"], 0.0)
    h2 = jnp.maximum(h1 @ params["W2"] + params["b2"], 0.0)
    return h2 @ params["W3"] + params["b3"]


def net_forward_ref_bf16(x, params):
    """JAX reference with the same bf16-in / f32-accumulate casts as the kernel."""
    xb = x.astype(jnp.bfloat16)
    w1 = params["W1"].astype(jnp.bfloat16)
    w2 = params["W2"].astype(jnp.bfloat16)
    w3 = params["W3"].astype(jnp.bfloat16)
    h1 = jnp.dot(xb, w1, preferred_element_type=jnp.float32) + params["b1"]
    h1 = jnp.maximum(h1, 0.0).astype(jnp.bfloat16)
    h2 = jnp.dot(h1, w2, preferred_element_type=jnp.float32) + params["b2"]
    h2 = jnp.maximum(h2, 0.0).astype(jnp.bfloat16)
    return jnp.dot(h2, w3, preferred_element_type=jnp.float32) + params["b3"]


if __name__ == "__main__":
    d, H = 32, 64
    key = jax.random.PRNGKey(0)
    k_x, k_p, k_x2 = jax.random.split(key, 3)
    params = init_params(k_p, d, H)

    # --- small batch (single grid step) ---
    B = 8
    x = jax.random.normal(k_x, (B, d), jnp.float32)
    out = jax.block_until_ready(net_forward(x, params))
    assert out.shape == (B, 20), out.shape
    ref_bf16 = jax.block_until_ready(net_forward_ref_bf16(x, params))
    ref_f32 = jax.block_until_ready(net_forward_ref_f32(x, params))
    assert jnp.allclose(out, ref_bf16, atol=1e-3, rtol=1e-3), \
        "mismatch vs bf16-matched reference"
    assert jnp.allclose(out, ref_f32, atol=1e-1, rtol=5e-2), \
        "mismatch vs f32 reference (beyond bf16 tolerance)"

    # --- larger, non-multiple-of-tile batch (exercises grid + padding path) ---
    B2 = 300
    x2 = jax.random.normal(k_x2, (B2, d), jnp.float32)
    out2 = jax.block_until_ready(net_forward(x2, params, block_b=128))
    assert out2.shape == (B2, 20), out2.shape
    ref2 = jax.block_until_ready(net_forward_ref_bf16(x2, params))
    assert jnp.allclose(out2, ref2, atol=1e-3, rtol=1e-3), \
        "mismatch vs bf16-matched reference (gridded batch)"

    print("KERNEL_OK")
</pallas_src>

<mosaic_0001>
module attributes {stable_mosaic.version = 11 : i64} {
  func.func @_mlp_kernel(%arg0: i32, %arg1: memref<8x32xbf16, #tpu.memory_space<vmem>>, %arg2: memref<32x64xbf16, #tpu.memory_space<vmem>>, %arg3: memref<1x64xf32, #tpu.memory_space<vmem>>, %arg4: memref<64x64xbf16, #tpu.memory_space<vmem>>, %arg5: memref<1x64xf32, #tpu.memory_space<vmem>>, %arg6: memref<64x128xbf16, #tpu.memory_space<vmem>>, %arg7: memref<1x128xf32, #tpu.memory_space<vmem>>, %arg8: memref<8x128xf32, #tpu.memory_space<vmem>>) attributes {dimension_semantics = [#tpu.dimension_semantics<parallel>], iteration_bounds = array<i64: 1>, scalar_prefetch = 0 : i64, scratch_operands = 0 : i64, tpu.core_type = #tpu.core_type<tc>, window_params = [{transform_indices = @transform_0, window_bounds = array<i64: 8, 32>}, {pipeline_mode = #tpu.pipeline_mode<synchronous>, transform_indices = @transform_1, window_bounds = array<i64: 32, 64>}, {pipeline_mode = #tpu.pipeline_mode<synchronous>, transform_indices = @transform_2, window_bounds = array<i64: 1, 64>}, {pipeline_mode = #tpu.pipeline_mode<synchronous>, transform_indices = @transform_3, window_bounds = array<i64: 64, 64>}, {pipeline_mode = #tpu.pipeline_mode<synchronous>, transform_indices = @transform_4, window_bounds = array<i64: 1, 64>}, {pipeline_mode = #tpu.pipeline_mode<synchronous>, transform_indices = @transform_5, window_bounds = array<i64: 64, 128>}, {pipeline_mode = #tpu.pipeline_mode<synchronous>, transform_indices = @transform_6, window_bounds = array<i64: 1, 128>}, {transform_indices = @transform_7, window_bounds = array<i64: 8, 128>}]} {
    %c0 = arith.constant 0 : index
    %c0_0 = arith.constant 0 : index
    %0 = vector.load %arg1[%c0, %c0_0] : memref<8x32xbf16, #tpu.memory_space<vmem>>, vector<8x32xbf16>
    %c0_1 = arith.constant 0 : index
    %c0_2 = arith.constant 0 : index
    %1 = vector.load %arg2[%c0_1, %c0_2] : memref<32x64xbf16, #tpu.memory_space<vmem>>, vector<32x64xbf16>
    %cst = arith.constant dense<0.000000e+00> : vector<8x64xf32>
    %2 = tpu.matmul %0, %1, %cst {dimension_numbers = #tpu.dot_dimension_numbers<[1], [0], [0], [1], [0, 0, 1, 1], [], []>} : vector<8x32xbf16>, vector<32x64xbf16>, vector<8x64xf32> -> vector<8x64xf32>
    %c0_3 = arith.constant 0 : index
    %c0_4 = arith.constant 0 : index
    %3 = vector.load %arg3[%c0_3, %c0_4] : memref<1x64xf32, #tpu.memory_space<vmem>>, vector<1x64xf32>
    %4 = vector.broadcast %3 : vector<1x64xf32> to vector<8x64xf32>
    %5 = arith.addf %2, %4 : vector<8x64xf32>
    %cst_5 = arith.constant 0.000000e+00 : f32
    %6 = vector.broadcast %cst_5 : f32 to vector<8x64xf32>
    %7 = arith.maximumf %5, %6 : vector<8x64xf32>
    %8 = arith.truncf %7 : vector<8x64xf32> to vector<8x64xbf16>
    %c0_6 = arith.constant 0 : index
    %c0_7 = arith.constant 0 : index
    %9 = vector.load %arg4[%c0_6, %c0_7] : memref<64x64xbf16, #tpu.memory_space<vmem>>, vector<64x64xbf16>
    %cst_8 = arith.constant dense<0.000000e+00> : vector<8x64xf32>
    %10 = tpu.matmul %8, %9, %cst_8 {dimension_numbers = #tpu.dot_dimension_numbers<[1], [0], [0], [1], [0, 0, 1, 1], [], []>} : vector<8x64xbf16>, vector<64x64xbf16>, vector<8x64xf32> -> vector<8x64xf32>
    %c0_9 = arith.constant 0 : index
    %c0_10 = arith.constant 0 : index
    %11 = vector.load %arg5[%c0_9, %c0_10] : memref<1x64xf32, #tpu.memory_space<vmem>>, vector<1x64xf32>
    %12 = vector.broadcast %11 : vector<1x64xf32> to vector<8x64xf32>
    %13 = arith.addf %10, %12 : vector<8x64xf32>
    %cst_11 = arith.constant 0.000000e+00 : f32
    %14 = vector.broadcast %cst_11 : f32 to vector<8x64xf32>
    %15 = arith.maximumf %13, %14 : vector<8x64xf32>
    %16 = arith.truncf %15 : vector<8x64xf32> to vector<8x64xbf16>
    %c0_12 = arith.constant 0 : index
    %c0_13 = arith.constant 0 : index
    %17 = vector.load %arg6[%c0_12, %c0_13] : memref<64x128xbf16, #tpu.memory_space<vmem>>, vector<64x128xbf16>
    %cst_14 = arith.constant dense<0.000000e+00> : vector<8x128xf32>
    %18 = tpu.matmul %16, %17, %cst_14 {dimension_numbers = #tpu.dot_dimension_numbers<[1], [0], [0], [1], [0, 0, 1, 1], [], []>} : vector<8x64xbf16>, vector<64x128xbf16>, vector<8x128xf32> -> vector<8x128xf32>
    %c0_15 = arith.constant 0 : index
    %c0_16 = arith.constant 0 : index
    %19 = vector.load %arg7[%c0_15, %c0_16] : memref<1x128xf32, #tpu.memory_space<vmem>>, vector<1x128xf32>
    %20 = vector.broadcast %19 : vector<1x128xf32> to vector<8x128xf32>
    %21 = arith.addf %18, %20 : vector<8x128xf32>
    %c0_17 = arith.constant 0 : index
    %c0_18 = arith.constant 0 : index
    %22 = vector.load %arg8[%c0_17, %c0_18] : memref<8x128xf32, #tpu.memory_space<vmem>>, vector<8x128xf32>
    tpu.vector_store %arg8[%c0_17, %c0_18], %21 {strides = array<i32>} : memref<8x128xf32, #tpu.memory_space<vmem>>, vector<8x128xf32>,
    return
  }
  func.func @transform_0(%arg0: i32) -> (i32, i32) {
    %c0_i32 = arith.constant 0 : i32
    %c0_i32_0 = arith.constant 0 : i32
    return %arg0, %c0_i32 : i32, i32
  }
  func.func @transform_1(%arg0: i32) -> (i32, i32) {
    %c0_i32 = arith.constant 0 : i32
    %c0_i32_0 = arith.constant 0 : i32
    %c0_i32_1 = arith.constant 0 : i32
    return %c0_i32, %c0_i32_0 : i32, i32
  }
  func.func @transform_2(%arg0: i32) -> (i32, i32) {
    %c0_i32 = arith.constant 0 : i32
    %c0_i32_0 = arith.constant 0 : i32
    %c0_i32_1 = arith.constant 0 : i32
    return %c0_i32, %c0_i32_0 : i32, i32
  }
  func.func @transform_3(%arg0: i32) -> (i32, i32) {
    %c0_i32 = arith.constant 0 : i32
    %c0_i32_0 = arith.constant 0 : i32
    %c0_i32_1 = arith.constant 0 : i32
    return %c0_i32, %c0_i32_0 : i32, i32
  }
  func.func @transform_4(%arg0: i32) -> (i32, i32) {
    %c0_i32 = arith.constant 0 : i32
    %c0_i32_0 = arith.constant 0 : i32
    %c0_i32_1 = arith.constant 0 : i32
    return %c0_i32, %c0_i32_0 : i32, i32
  }
  func.func @transform_5(%arg0: i32) -> (i32, i32) {
    %c0_i32 = arith.constant 0 : i32
    %c0_i32_0 = arith.constant 0 : i32
    %c0_i32_1 = arith.constant 0 : i32
    return %c0_i32, %c0_i32_0 : i32, i32
  }
  func.func @transform_6(%arg0: i32) -> (i32, i32) {
    %c0_i32 = arith.constant 0 : i32
    %c0_i32_0 = arith.constant 0 : i32
    %c0_i32_1 = arith.constant 0 : i32
    return %c0_i32, %c0_i32_0 : i32, i32
  }
  func.func @transform_7(%arg0: i32) -> (i32, i32) {
    %c0_i32 = arith.constant 0 : i32
    %c0_i32_0 = arith.constant 0 : i32
    return %arg0, %c0_i32 : i32, i32
  }
}

</mosaic_0001>

<bundles_post_ra>
// kernel: net_forward.1
= control target key start
LH: loop header
LB: loop body
LE: loop exit
PB: predicated region body
PF: predicated region fallthrough
CT: control target
= control target key end

     0   :  { %v376_v1 = vmov 0.0   ;;  %vm377_vm0 = vmmov 0   ;;  %vm52_vm1 = vcmask 261120   ;;  %s469_s0 = inlined_call_operand.vmem [shape: bf16[8,32], index: 0, kind: input, shape index: {}]   ;;  %s470_s1 = inlined_call_operand.vmem [shape: bf16[32,64], index: 1, kind: input, shape index: {}]   ;;  %s471_s2 = inlined_call_operand.vmem [shape: f32[1,64], index: 2, kind: input, shape index: {}]   ;;  %s472_s3 = inlined_call_operand.vmem [shape: bf16[64,64], index: 3, kind: input, shape index: {}]   ;;  %s473_s4 = inlined_call_operand.vmem [shape: f32[1,64], index: 4, kind: input, shape index: {}]   ;;  %s474_s5 = inlined_call_operand.vmem [shape: bf16[64,128], index: 5, kind: input, shape index: {}]   ;;  %s475_s6 = inlined_call_operand.vmem [shape: f32[1,128], index: 6, kind: input, shape index: {}]   ;;  %s476_s7 = inlined_call_operand.hbm [shape: f32[8,128], index: 7, kind: output, shape index: {}]  }
   0x1   :  { %v344_v0 = vld [vmem:[%s470_s1 + $0x8] sm:$0xff]   ;;  %309 = vmatprep.subr.bf16.mxu0 %v376_v1  ;;  %317 = vmatprep.subr.bf16.mxu1 %v376_v1  ;;  %v345_v2 = vld [vmem:[%s470_s1] sm:$0xff]   ;;  %v346_v3 = vld [vmem:[%s472_s3 + $0x18] sm:$0xff]  }
   0x2   :  { %310 = vmatpush3.bf16.msra.mxu0 %v344_v0  ;;  %313 = vmatprep.mubr.msk.bf16.mxu0 %vm377_vm0, %v376_v1  ;;  %v28_v4 = vld [vmem:[%s469_s0] sm:$0xf]  ;;  %v347_v5 = vld [vmem:[%s472_s3 + $0x10] sm:$0xff]  }
   0x3   :  { %311 = vmatprep.subr.bf16.mxu0 %v376_v1  ;;  %325 = vmatprep.mubr.msk.bf16.mxu1 %vm377_vm0, %v376_v1 }
   0x4   :  { %318 = vmatpush3.bf16.msra.mxu1 %v346_v3 }
   0x5   :  { %319 = vmatprep.subr.bf16.mxu1 %v376_v1 }
   0x6   :  { %312 = vmatpush3.bf16.msra.mxu0 %v345_v2 }
   0x7   :  { %329 = vmatprep.subr.bf16.mxu0 %v376_v1 }
   0x8   :  { %320 = vmatpush3.bf16.msra.mxu1 %v347_v5 }
   0x9   :  { %12 = vsyncpa [#allocation3], 0  ;;  %314 = vmatmul.mubr.msk.bf16.vlgmr.msra.gmra.mxu0 %vm52_vm1, %v28_v4  ;;  %321 = vmatprep.subr.bf16.mxu1 %v376_v1  ;;  %v348_v6 = vld [vmem:[%s472_s3 + $0x8] sm:$0xff]   ;;  %v349_v7 = vld [vmem:[%s472_s3] sm:$0xff]   ;;  %vm137_vm2 = vcmask 523264   ;;  %s378_s25 = smov [#allocation2]  }
   0xa   :  { %337 = vmatprep.mubr.msk.bf16.mxu0 %vm377_vm0, %v376_v1  ;;  %v350_v8 = vld [vmem:[%s474_s5 + $0x18] sm:$0xff]   ;;  %v351_v9 = vld [vmem:[%s474_s5 + $0x10] sm:$0xff]   ;;  %v280_v10 = vld [vmem:[%s471_s2] ss:$0 sm:$0xff] }
   0xb   :  { %330 = vmatpush3.bf16.msra.mxu0 %v350_v8  ;;  %v352_v18 = vld [vmem:[%s474_s5 + $0x8] sm:$0xff]   ;;  %v353_v19 = vld [vmem:[%s474_s5] sm:$0xff]   ;;  %s272_s5 = sshll.u32 %s378_s25, 4  ;;  %s273_s5 = int_to_ptr.vmem [resolvable:$true] %s272_s5 }
   0xc   :  { %322 = vmatpush3.bf16.msra.mxu1 %v348_v6  ;;  %331 = vmatprep.subr.bf16.mxu0 %v376_v1  ;;  %v284_v20 = vld [vmem:[%s473_s4] ss:$0 sm:$0xff]  ;;  %s354_s4 = scalar_lea.vmem %s273_s5, 128  ;;  %p359_p1 = scmp.lt.s32.totalorder %s273_s5, %s273_s5 }
   0xd   :  { %323 = vmatprep.subr.bf16.mxu1 %v376_v1  ;;  %v290_v28 = vld [vmem:[%s475_s6] ss:$0 sm:$0xff]  ;;  %p355_p0 = scmp.ne.s32.totalorder %s273_s5, %s354_s4  ;;  %p360_p2 = scmp.lt.s32.totalorder %s354_s4, %s354_s4 }
   0xf   :  { %332 = vmatpush3.bf16.msra.mxu0 %v351_v9  ;;  %p361_p3 = por %p360_p2, %p359_p1 }
  0x10   :  { %324 = vmatpush3.bf16.msra.mxu1 %v349_v7  ;;  %333 = vmatprep.subr.bf16.mxu0 %v376_v1 }
  0x11   :  { %p362_p4 = pnand %p361_p3, %p355_p0 }
  0x13   :  { %334 = vmatpush3.bf16.msra.mxu0 %v352_v18 }
  0x14   :  { %335 = vmatprep.subr.bf16.mxu0 %v376_v1 }
  0x17   :  { %336 = vmatpush3.bf16.msra.mxu0 %v353_v19 }
  0xc9   :  { %v90_v11 = vpop.f32.mrf.mxu0 }
  0xca   :  { %v91_v12 = vadd.f32 %v280_v10, %v90_v11 }
  0xcb   :  { %v315_v13 = vpop.f32.mrf.mxu0 }
  0xcc   :  { %v96_v14 = vmax.f32 %v91_v12, 0.0 }
  0xcd   :  { %v93_v15 = vpop.f32.mrf.mxu0 }
  0xce   :  { %v97_v16 = vpack.c.bf16 %v96_v14, %v96_v14 }
  0xcf   :  { %v316_v17 = vpop.f32.mrf.mxu0 }
  0xd0   :  { %326 = vmatmul.mubr.msk.bf16.vlgmr.msra.gmra.mxu1 %vm137_vm2, %v97_v16 }
 0x190   :  { %v175_v21 = vpop.f32.mrf.mxu1 }
 0x191   :  { %v176_v22 = vadd.f32 %v284_v20, %v175_v21 }
 0x192   :  { %v327_v23 = vpop.f32.mrf.mxu1 }
 0x193   :  { %v181_v24 = vmax.f32 %v176_v22, 0.0 }
 0x194   :  { %v178_v25 = vpop.f32.mrf.mxu1 }
 0x195   :  { %v182_v26 = vpack.c.bf16 %v181_v24, %v181_v24 }
 0x196   :  { %v328_v27 = vpop.f32.mrf.mxu1 }
 0x197   :  { %338 = vmatmul.mubr.msk.bf16.vlgmr.msra.gmra.mxu0 %vm137_vm2, %v182_v26 }
 0x257   :  { %v259_v29 = vpop.f32.mrf.mxu0 }
 0x258   :  { %v260_v30 = vadd.f32 %v290_v28, %v259_v29 }
 0x259   :  { %v339_v31 = vpop.f32.mrf.mxu0 }
 0x25a   :  { %265 = vst [vmem:[#allocation2] sm:$0xff] %v260_v30 }
 0x25b   :  { %v262_v32 = vpop.f32.mrf.mxu0 }
 0x25c   :  { %365 = shalt.err (!%p362_p4)
}
 0x25d   :  { %275 = dma.vmem_to_hbm [thread:$0]  %s273_s5, 128, %s476_s7, [#allocation3]   ;;  %v340_v33 = vpop.f32.mrf.mxu0 }
 0x25e   :  { %374 = dma.done.wait [#allocation3], 128  }
 0x25f   :  { %375 = vsyncadd [#allocation3], 4294967168 }
 0x260   :  { %279 = vsyncpa [#allocation3], 1 }

</bundles_post_ra>
